<compile_context>
chip_gen: v5e
topology: v5e:2x2
jax: 0.10.0
libtpu: 0.0.40
codegen_flags: <defaults>
</compile_context>

<pallas_src>
import functools

import jax
import jax.numpy as jnp
from jax.experimental import pallas as pl
from jax.experimental.pallas import tpu as pltpu

IN_F = 784
H_F = 200          # logical hidden width
H_PAD = 256        # hidden padded to 2x128 lanes (zero columns -> exact math)
OUT_F = 10
OUT_PAD = 128      # last-layer matmul width padded to one full vreg of lanes
MAX_TB = 1024      # max batch-tile rows (keeps the grid at >=2 steps for B>=32)


def _round_up(a, m):
    return ((a + m - 1) // m) * m


def mlp_kernel(x_ref, w0_ref, b0_ref, w1_ref, b1_ref, w2_ref, b2_ref, o_ref):
    # x arrives as f32 straight from HBM; cast to bf16 in-kernel (no separate
    # host-side cast pass over HBM).
    x = x_ref[...].astype(jnp.bfloat16)
    # Layer 0: (TB, 784) @ (784, 256) + b0, ReLU   (bf16 operands, f32 acc)
    h0 = jnp.dot(x, w0_ref[...], preferred_element_type=jnp.float32)
    h0 = jnp.maximum(h0 + b0_ref[...], 0.0)
    # Layer 1: (TB, 256) @ (256, 256) + b1, ReLU
    h1 = jnp.dot(h0.astype(jnp.bfloat16), w1_ref[...],
                 preferred_element_type=jnp.float32)
    h1 = jnp.maximum(h1 + b1_ref[...], 0.0)
    # Layer 2: (TB, 256) @ (256, 128) + b2; store only the 10 real logits.
    h2 = jnp.dot(h1.astype(jnp.bfloat16), w2_ref[...],
                 preferred_element_type=jnp.float32)
    o_ref[...] = (h2 + b2_ref[...])[:, :OUT_F].astype(o_ref.dtype)


def prepare_params(params):
    """One-time transform of PyTorch-layout params (W: (out,in), b: (out,))
    into kernel layout: W_t (in,out) bf16 with hidden dims zero-padded to 256
    and the last layer padded to 128 output columns; biases f32, (1, out)."""
    w0, b0, w1, b1, w2, b2 = params
    w0_t = jnp.zeros((IN_F, H_PAD), jnp.bfloat16).at[:, :H_F].set(
        w0.T.astype(jnp.bfloat16))                            # (784, 256)
    w1_t = jnp.zeros((H_PAD, H_PAD), jnp.bfloat16).at[:H_F, :H_F].set(
        w1.T.astype(jnp.bfloat16))                            # (256, 256)
    w2_t = jnp.zeros((H_PAD, OUT_PAD), jnp.bfloat16).at[:H_F, :OUT_F].set(
        w2.T.astype(jnp.bfloat16))                            # (256, 128)
    b0_r = jnp.zeros((1, H_PAD), jnp.float32).at[0, :H_F].set(
        b0.astype(jnp.float32))                               # (1, 256)
    b1_r = jnp.zeros((1, H_PAD), jnp.float32).at[0, :H_F].set(
        b1.astype(jnp.float32))                               # (1, 256)
    b2_r = jnp.zeros((1, OUT_PAD), jnp.float32).at[0, :OUT_F].set(
        b2.astype(jnp.float32))                               # (1, 128)
    return (w0_t, b0_r, w1_t, b1_r, w2_t, b2_r)


@functools.partial(jax.jit, static_argnames=("max_block_rows",))
def mlp_forward(x, prepared, max_block_rows=MAX_TB):
    """x: (B, 1, 28, 28) float32 NCHW. Returns (B, 10) float32 logits."""
    w0_t, b0_r, w1_t, b1_r, w2_t, b2_r = prepared
    B = x.shape[0]
    x_flat = x.reshape(B, -1)          # stays f32; bf16 cast happens in-kernel

    # Tile sizing: >=2 grid steps (even count so v7x megacore uses both TCs),
    # <=1024 rows per tile, rows a multiple of 16, tail-aware padding.
    if B >= 32:
        n_steps = max(2, _round_up(-(-B // max_block_rows), 2))
    else:
        n_steps = 1
    tb = min(max_block_rows, _round_up(-(-B // n_steps), 16))
    b_pad = _round_up(B, tb)
    if b_pad != B:
        x_flat = jnp.pad(x_flat, ((0, b_pad - B), (0, 0)))
    grid = (b_pad // tb,)

    resident = lambda shape: pl.BlockSpec(shape, lambda i: (0, 0))

    out = pl.pallas_call(
        mlp_kernel,
        out_shape=jax.ShapeDtypeStruct((b_pad, OUT_F), jnp.float32),
        grid=grid,
        in_specs=[
            pl.BlockSpec((tb, IN_F), lambda i: (i, 0)),   # x: tiled over batch
            resident(w0_t.shape), resident(b0_r.shape),   # weights/bias resident
            resident(w1_t.shape), resident(b1_r.shape),
            resident(w2_t.shape), resident(b2_r.shape),
        ],
        out_specs=pl.BlockSpec((tb, OUT_F), lambda i: (i, 0)),
        compiler_params=pltpu.CompilerParams(
            dimension_semantics=("parallel",),
            vmem_limit_bytes=32 * 1024 * 1024,   # ~2x the <=16 MB working set
        ),
    )(x_flat, w0_t, b0_r, w1_t, b1_r, w2_t, b2_r)

    return out[:B] if b_pad != B else out


def init_params(key):
    """Deterministic init mirroring nn.Linear shapes: W (out, in), b (out,)."""
    dims = [(H_F, IN_F), (H_F, H_F), (OUT_F, H_F)]
    params = []
    for i, (out_f, in_f) in enumerate(dims):
        kw, kb = jax.random.split(jax.random.fold_in(key, i))
        bound = 1.0 / (in_f ** 0.5)  # PyTorch Linear default init range
        w = jax.random.uniform(kw, (out_f, in_f), jnp.float32, -bound, bound)
        b = jax.random.uniform(kb, (out_f,), jnp.float32, -bound, bound)
        params += [w, b]
    return tuple(params)


if __name__ == "__main__":
    key = jax.random.PRNGKey(0)
    params = init_params(key)
    prepared = prepare_params(params)

    # Small example input consistent with the module: batch=2, 1x28x28 images.
    x = jax.random.normal(jax.random.fold_in(key, 100), (2, 1, 28, 28), jnp.float32)

    logits = mlp_forward(x, prepared)
    jax.block_until_ready(logits)
    assert logits.shape == (2, 10)

    # Reference in plain JAX, mirroring the kernel's bf16-operand / f32-acc math
    # (unpadded weights; the zero padding in the kernel is mathematically exact).
    w0, b0, w1, b1, w2, b2 = params
    xf = x.reshape(x.shape[0], -1)
    bf = jnp.bfloat16
    ref = jnp.maximum(
        jnp.dot(xf.astype(bf), w0.T.astype(bf), preferred_element_type=jnp.float32) + b0, 0.0)
    ref = jnp.maximum(
        jnp.dot(ref.astype(bf), w1.T.astype(bf), preferred_element_type=jnp.float32) + b1, 0.0)
    ref = jnp.dot(ref.astype(bf), w2.T.astype(bf), preferred_element_type=jnp.float32) + b2
    assert jnp.allclose(logits, ref, atol=1e-2, rtol=1e-2), (
        float(jnp.max(jnp.abs(logits - ref))))

    # Also exercise a multi-step grid (even step count) to cover the tiled path.
    xb = jax.random.normal(jax.random.fold_in(key, 200), (96, 1, 28, 28), jnp.float32)
    logits_b = mlp_forward(xb, prepared)
    jax.block_until_ready(logits_b)
    assert logits_b.shape == (96, 10)

    print("KERNEL_OK")
</pallas_src>

<mosaic_0001>
module attributes {stable_mosaic.version = 11 : i64} {
  func.func @mlp_kernel(%arg0: i32, %arg1: memref<16x784xf32, #tpu.memory_space<vmem>>, %arg2: memref<784x256xbf16, #tpu.memory_space<vmem>>, %arg3: memref<1x256xf32, #tpu.memory_space<vmem>>, %arg4: memref<256x256xbf16, #tpu.memory_space<vmem>>, %arg5: memref<1x256xf32, #tpu.memory_space<vmem>>, %arg6: memref<256x128xbf16, #tpu.memory_space<vmem>>, %arg7: memref<1x128xf32, #tpu.memory_space<vmem>>, %arg8: memref<16x10xf32, #tpu.memory_space<vmem>>) attributes {dimension_semantics = [#tpu.dimension_semantics<parallel>], iteration_bounds = array<i64: 1>, scalar_prefetch = 0 : i64, scratch_operands = 0 : i64, tpu.core_type = #tpu.core_type<tc>, window_params = [{transform_indices = @transform_0, window_bounds = array<i64: 16, 784>}, {pipeline_mode = #tpu.pipeline_mode<synchronous>, transform_indices = @transform_1, window_bounds = array<i64: 784, 256>}, {pipeline_mode = #tpu.pipeline_mode<synchronous>, transform_indices = @transform_2, window_bounds = array<i64: 1, 256>}, {pipeline_mode = #tpu.pipeline_mode<synchronous>, transform_indices = @transform_3, window_bounds = array<i64: 256, 256>}, {pipeline_mode = #tpu.pipeline_mode<synchronous>, transform_indices = @transform_4, window_bounds = array<i64: 1, 256>}, {pipeline_mode = #tpu.pipeline_mode<synchronous>, transform_indices = @transform_5, window_bounds = array<i64: 256, 128>}, {pipeline_mode = #tpu.pipeline_mode<synchronous>, transform_indices = @transform_6, window_bounds = array<i64: 1, 128>}, {transform_indices = @transform_7, window_bounds = array<i64: 16, 10>}]} {
    %c0 = arith.constant 0 : index
    %c0_0 = arith.constant 0 : index
    %0 = vector.load %arg1[%c0, %c0_0] : memref<16x784xf32, #tpu.memory_space<vmem>>, vector<16x784xf32>
    %1 = arith.truncf %0 : vector<16x784xf32> to vector<16x784xbf16>
    %c0_1 = arith.constant 0 : index
    %c0_2 = arith.constant 0 : index
    %2 = vector.load %arg2[%c0_1, %c0_2] : memref<784x256xbf16, #tpu.memory_space<vmem>>, vector<784x256xbf16>
    %cst = arith.constant dense<0.000000e+00> : vector<16x256xf32>
    %3 = tpu.matmul %1, %2, %cst {dimension_numbers = #tpu.dot_dimension_numbers<[1], [0], [0], [1], [0, 0, 1, 1], [], []>} : vector<16x784xbf16>, vector<784x256xbf16>, vector<16x256xf32> -> vector<16x256xf32>
    %c0_3 = arith.constant 0 : index
    %c0_4 = arith.constant 0 : index
    %4 = vector.load %arg3[%c0_3, %c0_4] : memref<1x256xf32, #tpu.memory_space<vmem>>, vector<1x256xf32>
    %5 = vector.broadcast %4 : vector<1x256xf32> to vector<16x256xf32>
    %6 = arith.addf %3, %5 : vector<16x256xf32>
    %cst_5 = arith.constant 0.000000e+00 : f32
    %7 = vector.broadcast %cst_5 : f32 to vector<16x256xf32>
    %8 = arith.maximumf %6, %7 : vector<16x256xf32>
    %9 = arith.truncf %8 : vector<16x256xf32> to vector<16x256xbf16>
    %c0_6 = arith.constant 0 : index
    %c0_7 = arith.constant 0 : index
    %10 = vector.load %arg4[%c0_6, %c0_7] : memref<256x256xbf16, #tpu.memory_space<vmem>>, vector<256x256xbf16>
    %cst_8 = arith.constant dense<0.000000e+00> : vector<16x256xf32>
    %11 = tpu.matmul %9, %10, %cst_8 {dimension_numbers = #tpu.dot_dimension_numbers<[1], [0], [0], [1], [0, 0, 1, 1], [], []>} : vector<16x256xbf16>, vector<256x256xbf16>, vector<16x256xf32> -> vector<16x256xf32>
    %c0_9 = arith.constant 0 : index
    %c0_10 = arith.constant 0 : index
    %12 = vector.load %arg5[%c0_9, %c0_10] : memref<1x256xf32, #tpu.memory_space<vmem>>, vector<1x256xf32>
    %13 = vector.broadcast %12 : vector<1x256xf32> to vector<16x256xf32>
    %14 = arith.addf %11, %13 : vector<16x256xf32>
    %cst_11 = arith.constant 0.000000e+00 : f32
    %15 = vector.broadcast %cst_11 : f32 to vector<16x256xf32>
    %16 = arith.maximumf %14, %15 : vector<16x256xf32>
    %17 = arith.truncf %16 : vector<16x256xf32> to vector<16x256xbf16>
    %c0_12 = arith.constant 0 : index
    %c0_13 = arith.constant 0 : index
    %18 = vector.load %arg6[%c0_12, %c0_13] : memref<256x128xbf16, #tpu.memory_space<vmem>>, vector<256x128xbf16>
    %cst_14 = arith.constant dense<0.000000e+00> : vector<16x128xf32>
    %19 = tpu.matmul %17, %18, %cst_14 {dimension_numbers = #tpu.dot_dimension_numbers<[1], [0], [0], [1], [0, 0, 1, 1], [], []>} : vector<16x256xbf16>, vector<256x128xbf16>, vector<16x128xf32> -> vector<16x128xf32>
    %c0_15 = arith.constant 0 : index
    %c0_16 = arith.constant 0 : index
    %20 = vector.load %arg7[%c0_15, %c0_16] : memref<1x128xf32, #tpu.memory_space<vmem>>, vector<1x128xf32>
    %21 = vector.broadcast %20 : vector<1x128xf32> to vector<16x128xf32>
    %22 = arith.addf %19, %21 : vector<16x128xf32>
    %23 = vector.extract_strided_slice %22 {offsets = [0, 0], sizes = [16, 10], strides = [1, 1]} : vector<16x128xf32> to vector<16x10xf32>
    %c0_17 = arith.constant 0 : index
    %c0_18 = arith.constant 0 : index
    %24 = vector.load %arg8[%c0_17, %c0_18] : memref<16x10xf32, #tpu.memory_space<vmem>>, vector<16x10xf32>
    tpu.vector_store %arg8[%c0_17, %c0_18], %23 {strides = array<i32>} : memref<16x10xf32, #tpu.memory_space<vmem>>, vector<16x10xf32>,
    return
  }
  func.func @transform_0(%arg0: i32) -> (i32, i32) {
    %c0_i32 = arith.constant 0 : i32
    %c0_i32_0 = arith.constant 0 : i32
    return %arg0, %c0_i32 : i32, i32
  }
  func.func @transform_1(%arg0: i32) -> (i32, i32) {
    %c0_i32 = arith.constant 0 : i32
    %c0_i32_0 = arith.constant 0 : i32
    %c0_i32_1 = arith.constant 0 : i32
    return %c0_i32, %c0_i32_0 : i32, i32
  }
  func.func @transform_2(%arg0: i32) -> (i32, i32) {
    %c0_i32 = arith.constant 0 : i32
    %c0_i32_0 = arith.constant 0 : i32
    %c0_i32_1 = arith.constant 0 : i32
    return %c0_i32, %c0_i32_0 : i32, i32
  }
  func.func @transform_3(%arg0: i32) -> (i32, i32) {
    %c0_i32 = arith.constant 0 : i32
    %c0_i32_0 = arith.constant 0 : i32
    %c0_i32_1 = arith.constant 0 : i32
    return %c0_i32, %c0_i32_0 : i32, i32
  }
  func.func @transform_4(%arg0: i32) -> (i32, i32) {
    %c0_i32 = arith.constant 0 : i32
    %c0_i32_0 = arith.constant 0 : i32
    %c0_i32_1 = arith.constant 0 : i32
    return %c0_i32, %c0_i32_0 : i32, i32
  }
  func.func @transform_5(%arg0: i32) -> (i32, i32) {
    %c0_i32 = arith.constant 0 : i32
    %c0_i32_0 = arith.constant 0 : i32
    %c0_i32_1 = arith.constant 0 : i32
    return %c0_i32, %c0_i32_0 : i32, i32
  }
  func.func @transform_6(%arg0: i32) -> (i32, i32) {
    %c0_i32 = arith.constant 0 : i32
    %c0_i32_0 = arith.constant 0 : i32
    %c0_i32_1 = arith.constant 0 : i32
    return %c0_i32, %c0_i32_0 : i32, i32
  }
  func.func @transform_7(%arg0: i32) -> (i32, i32) {
    %c0_i32 = arith.constant 0 : i32
    %c0_i32_0 = arith.constant 0 : i32
    return %arg0, %c0_i32 : i32, i32
  }
}

</mosaic_0001>

<bundles_post_ra>
// kernel: mlp_forward.1
= control target key start
LH: loop header
LB: loop body
LE: loop exit
PB: predicated region body
PF: predicated region fallthrough
CT: control target
= control target key end

     0   :  { %12 = vsyncpa [#allocation3], 0  ;;  %s2435_s0 = inlined_call_operand.vmem [shape: f32[16,784], index: 0, kind: input, shape index: {}]   ;;  %s2436_s1 = inlined_call_operand.hbm [shape: bf16[784,256], index: 1, kind: input, shape index: {}]   ;;  %s2437_s2 = inlined_call_operand.vmem [shape: f32[1,256], index: 2, kind: input, shape index: {}]   ;;  %s2438_s3 = inlined_call_operand.vmem [shape: bf16[256,256], index: 3, kind: input, shape index: {}]   ;;  %s2439_s4 = inlined_call_operand.vmem [shape: f32[1,256], index: 4, kind: input, shape index: {}]   ;;  %s2440_s5 = inlined_call_operand.hbm [shape: bf16[256,128], index: 5, kind: input, shape index: {}]   ;;  %s2441_s6 = inlined_call_operand.vmem [shape: f32[1,128], index: 6, kind: input, shape index: {}]   ;;  %s2442_s7 = inlined_call_operand.vmem [shape: f32[16,10], index: 7, kind: output, shape index: {}]  }
   0x1   :  { %s20_s26 = sshll.u32 %s2436_s1, 4  ;;  %s21_s26 = int_to_ptr.hbm [resolvable:$true] %s20_s26 }
   0x2   :  { %13 = vsyncpa [#allocation5], 0  ;;  %s2100_s27 = smov [#allocation2]   ;;  %s39_s8 = sshll.u32 %s2440_s5, 4  ;;  %s40_s8 = int_to_ptr.hbm [resolvable:$true] %s39_s8 }
   0x3   :  { %s22_s28 = sshll.u32 %s2100_s27, 4  ;;  %s2101_s9 = smov 128   ;;  %s23_s28 = int_to_ptr.vmem [resolvable:$true] %s22_s28 }
   0x4   :  { %s2102_s10 = smov 8   ;;  %s2103_s11 = smov [#allocation4]  }
   0x5   :  { %28 = dma.hbm_to_vmem [thread:$0]  %s21_s26, 12544, %s23_s28, [#allocation3], %s2101_s9, %s2101_s9, %s2102_s10  }
   0x6   :  { %s41_s12 = sshll.u32 %s2103_s11, 4  ;;  %s2104_s13 = smov 64   ;;  %s42_s12 = int_to_ptr.vmem [resolvable:$true] %s41_s12 }
   0x7   :  { %s2105_s14 = smov 4  }
   0x8   :  { %47 = dma.hbm_to_vmem [thread:$0]  %s40_s8, 2048, %s42_s12, [#allocation5], %s2104_s13, %s2104_s13, %s2105_s14  }
   0x9   :  { %2096 = dma.done.wait [#allocation3], 12544  }
   0xa   :  { %2097 = vsyncadd [#allocation3], 4294954752 }
   0xb   :  { %2098 = dma.done.wait [#allocation5], 2048  }
   0xc   :  { %2099 = vsyncadd [#allocation5], 4294965248  ;;  %v1367_v0 = vld [vmem:[#allocation2 + $0x70] sm:$0xf]  ;;  %v1910_v1 = vld [vmem:[#allocation2 + $0x74] sm:$0xf0] }
   0xd   :  { %v1495_v2 = vld [vmem:[#allocation2 + $0x170] sm:$0xf]  ;;  %v1368_v3 = vor.u32 %v1910_v1, %v1367_v0  ;;  %v1942_v4 = vld [vmem:[#allocation2 + $0x174] sm:$0xf0]  ;;  %v1359_v11 = vld [vmem:[#allocation2 + $0x60] sm:$0xf] }
   0xe   :  { %v1559_v5 = vld [vmem:[#allocation2 + $0x1f0] sm:$0xf]  ;;  %v1958_v6 = vld [vmem:[#allocation2 + $0x1f4] sm:$0xf0]  ;;  %v1496_v7 = vor.u32 %v1942_v4, %v1495_v2  ;;  %v1908_v13 = vld [vmem:[#allocation2 + $0x64] sm:$0xf0] }
   0xf   :  { %v1560_v8 = vor.u32 %v1958_v6, %v1559_v5  ;;  %v1431_v9 = vld [vmem:[#allocation2 + $0xf0] sm:$0xf]  ;;  %v1926_v10 = vld [vmem:[#allocation2 + $0xf4] sm:$0xf0]  ;;  %678 = vmatpush.bf16.msra.mxu0 %v1368_v3  ;;  %v1487_v14 = vld [vmem:[#allocation2 + $0x160] sm:$0xf]  ;;  %v1360_v16 = vor.u32 %v1908_v13, %v1359_v11 }
  0x10   :  { %v1432_v12 = vor.u32 %v1926_v10, %v1431_v9  ;;  %v1940_v15 = vld [vmem:[#allocation2 + $0x164] sm:$0xf0]  ;;  %706 = vmatpush.bf16.msra.mxu2 %v1496_v7  ;;  %v1551_v18 = vld [vmem:[#allocation2 + $0x1e0] sm:$0xf]  ;;  %v1351_v23 = vld [vmem:[#allocation2 + $0x50] sm:$0xf] }
  0x11   :  { %720 = vmatpush.bf16.msra.mxu3 %v1560_v8  ;;  %v1488_v17 = vor.u32 %v1940_v15, %v1487_v14  ;;  %v1956_v19 = vld [vmem:[#allocation2 + $0x1e4] sm:$0xf0]  ;;  %v1423_v20 = vld [vmem:[#allocation2 + $0xe0] sm:$0xf]  ;;  %v1906_v24 = vld [vmem:[#allocation2 + $0x54] sm:$0xf0] }
  0x12   :  { %692 = vmatpush.bf16.msra.mxu1 %v1432_v12  ;;  %v1552_v21 = vor.u32 %v1956_v19, %v1551_v18  ;;  %v1924_v22 = vld [vmem:[#allocation2 + $0xe4] sm:$0xf0]  ;;  %v1479_v26 = vld [vmem:[#allocation2 + $0x150] sm:$0xf]  ;;  %v1938_v27 = vld [vmem:[#allocation2 + $0x154] sm:$0xf0]  ;;  %v1352_v29 = vor.u32 %v1906_v24, %v1351_v23 }
  0x13   :  { %v1424_v25 = vor.u32 %v1924_v22, %v1423_v20  ;;  %v1543_v28 = vld [vmem:[#allocation2 + $0x1d0] sm:$0xf]  ;;  %679 = vmatpush.bf16.msra.mxu0 %v1360_v16  ;;  %v1954_v30 = vld [vmem:[#allocation2 + $0x1d4] sm:$0xf0]  ;;  %v1480_v33 = vor.u32 %v1938_v27, %v1479_v26  ;;  %v1343_v35 = vld [vmem:[#allocation2 + $0x40] sm:$0xf] }
  0x14   :  { %v1415_v31 = vld [vmem:[#allocation2 + $0xd0] sm:$0xf]  ;;  %v1922_v32 = vld [vmem:[#allocation2 + $0xd4] sm:$0xf0]  ;;  %707 = vmatpush.bf16.msra.mxu2 %v1488_v17  ;;  %v1544_v34 = vor.u32 %v1954_v30, %v1543_v28  ;;  %v1904_v36 = vld [vmem:[#allocation2 + $0x44] sm:$0xf0] }
  0x15   :  { %721 = vmatpush.bf16.msra.mxu3 %v1552_v21  ;;  %v1471_v37 = vld [vmem:[#allocation2 + $0x140] sm:$0xf]  ;;  %v1416_v38 = vor.u32 %v1922_v32, %v1415_v31  ;;  %v1936_v39 = vld [vmem:[#allocation2 + $0x144] sm:$0xf0]  ;;  %v1344_v44 = vor.u32 %v1904_v36, %v1343_v35  ;;  %v1335_v47 = vld [vmem:[#allocation2 + $0x30] sm:$0xf] }
  0x16   :  { %693 = vmatpush.bf16.msra.mxu1 %v1424_v25  ;;  %v1535_v40 = vld [vmem:[#allocation2 + $0x1c0] sm:$0xf]  ;;  %v1952_v41 = vld [vmem:[#allocation2 + $0x1c4] sm:$0xf0]  ;;  %v1472_v45 = vor.u32 %v1936_v39, %v1471_v37  ;;  %v1902_v48 = vld [vmem:[#allocation2 + $0x34] sm:$0xf0] }
  0x17   :  { %v1407_v42 = vld [vmem:[#allocation2 + $0xc0] sm:$0xf]  ;;  %v1920_v43 = vld [vmem:[#allocation2 + $0xc4] sm:$0xf0]  ;;  %680 = vmatpush.bf16.msra.mxu0 %v1352_v29  ;;  %v1536_v46 = vor.u32 %v1952_v41, %v1535_v40  ;;  %v1463_v49 = vld [vmem:[#allocation2 + $0x130] sm:$0xf]  ;;  %v1336_v56 = vor.u32 %v1902_v48, %v1335_v47 }
  0x18   :  { %708 = vmatpush.bf16.msra.mxu2 %v1480_v33  ;;  %v1408_v50 = vor.u32 %v1920_v43, %v1407_v42  ;;  %v1934_v51 = vld [vmem:[#allocation2 + $0x134] sm:$0xf0]  ;;  %v1527_v52 = vld [vmem:[#allocation2 + $0x1b0] sm:$0xf]  ;;  %v1327_v59 = vld [vmem:[#allocation2 + $0x20] sm:$0xf] }
  0x19   :  { %722 = vmatpush.bf16.msra.mxu3 %v1544_v34  ;;  %v1950_v53 = vld [vmem:[#allocation2 + $0x1b4] sm:$0xf0]  ;;  %v1399_v54 = vld [vmem:[#allocation2 + $0xb0] sm:$0xf]  ;;  %v1464_v57 = vor.u32 %v1934_v51, %v1463_v49  ;;  %v1900_v60 = vld [vmem:[#allocation2 + $0x24] sm:$0xf0] }
  0x1a   :  { %694 = vmatpush.bf16.msra.mxu1 %v1416_v38  ;;  %v1918_v55 = vld [vmem:[#allocation2 + $0xb4] sm:$0xf0]  ;;  %v1528_v58 = vor.u32 %v1950_v53, %v1527_v52  ;;  %v1455_v61 = vld [vmem:[#allocation2 + $0x120] sm:$0xf]  ;;  %v1932_v63 = vld [vmem:[#allocation2 + $0x124] sm:$0xf0]  ;;  %v1328_v4 = vor.u32 %v1900_v60, %v1327_v59 }
  0x1b   :  { %681 = vmatpush.bf16.msra.mxu0 %v1344_v44  ;;  %v1400_v62 = vor.u32 %v1918_v55, %v1399_v54  ;;  %v1519_v0 = vld [vmem:[#allocation2 + $0x1a0] sm:$0xf]  ;;  %v1948_v1 = vld [vmem:[#allocation2 + $0x1a4] sm:$0xf0]  ;;  %v1319_v5 = vld [vmem:[#allocation2 + $0x10] sm:$0xf]  ;;  %v1456_v6 = vor.u32 %v1932_v63, %v1455_v61 }
  0x1c   :  { %709 = vmatpush.bf16.msra.mxu2 %v1472_v45  ;;  %v1391_v2 = vld [vmem:[#allocation2 + $0xa0] sm:$0xf]  ;;  %v1916_v3 = vld [vmem:[#allocation2 + $0xa4] sm:$0xf0]  ;;  %v1520_v7 = vor.u32 %v1948_v1, %v1519_v0  ;;  %v1898_v8 = vld [vmem:[#allocation2 + $0x14] sm:$0xf0] }
  0x1d   :  { %723 = vmatpush.bf16.msra.mxu3 %v1536_v46  ;;  %v1447_v9 = vld [vmem:[#allocation2 + $0x110] sm:$0xf]  ;;  %v1930_v10 = vld [vmem:[#allocation2 + $0x114] sm:$0xf0]  ;;  %v1392_v11 = vor.u32 %v1916_v3, %v1391_v2  ;;  %v1311_v16 = vld [vmem:[#allocation2] sm:$0xf]  ;;  %v1320_v18 = vor.u32 %v1898_v8, %v1319_v5 }
  0x1e   :  { %695 = vmatpush.bf16.msra.mxu1 %v1408_v50  ;;  %v1511_v12 = vld [vmem:[#allocation2 + $0x190] sm:$0xf]  ;;  %v1946_v13 = vld [vmem:[#allocation2 + $0x194] sm:$0xf0]  ;;  %v1896_v17 = vld [vmem:[#allocation2 + $0x4] sm:$0xf0]  ;;  %v1448_v23 = vor.u32 %v1930_v10, %v1447_v9 }
  0x1f   :  { %682 = vmatpush.bf16.msra.mxu0 %v1336_v56  ;;  %v1383_v14 = vld [vmem:[#allocation2 + $0x90] sm:$0xf]  ;;  %v1914_v15 = vld [vmem:[#allocation2 + $0x94] sm:$0xf0]  ;;  %v1439_v19 = vld [vmem:[#allocation2 + $0x100] sm:$0xf]  ;;  %v1512_v24 = vor.u32 %v1946_v13, %v1511_v12  ;;  %v1312_v35 = vor.u32 %v1896_v17, %v1311_v16 }
  0x20   :  { %710 = vmatpush.bf16.msra.mxu2 %v1464_v57  ;;  %v1928_v20 = vld [vmem:[#allocation2 + $0x104] sm:$0xf0]  ;;  %v1503_v21 = vld [vmem:[#allocation2 + $0x180] sm:$0xf]  ;;  %v1623_v25 = vld [vmem:[#allocation2 + $0x270] sm:$0xf]  ;;  %v1384_v28 = vor.u32 %v1914_v15, %v1383_v14 }
  0x21   :  { %724 = vmatpush.bf16.msra.mxu3 %v1528_v58  ;;  %v1944_v22 = vld [vmem:[#allocation2 + $0x184] sm:$0xf0]  ;;  %v1974_v26 = vld [vmem:[#allocation2 + $0x274] sm:$0xf0]  ;;  %v1909_v27 = vld [vmem:[#allocation2 + $0x74] sm:$0xf]  ;;  %v1440_v39 = vor.u32 %v1928_v20, %v1439_v19 }
  0x22   :  { %696 = vmatpush.bf16.msra.mxu1 %v1400_v62  ;;  %v1369_v29 = vld [vmem:[#allocation2 + $0x78] sm:$0xf0]  ;;  %v1375_v30 = vld [vmem:[#allocation2 + $0x80] sm:$0xf]  ;;  %v1912_v31 = vld [vmem:[#allocation2 + $0x84] sm:$0xf0]  ;;  %v1504_v40 = vor.u32 %v1944_v22, %v1503_v21  ;;  %v1624_v44 = vor.u32 %v1974_v26, %v1623_v25 }
  0x23   :  { %683 = vmatpush.bf16.msra.mxu0 %v1328_v4  ;;  %v61_v32 = vld [vmem:[%s2435_s0 + $0x10] sm:$0xff]  ;;  %v68_v33 = vld [vmem:[%s2435_s0 + $0x48] sm:$0xff]  ;;  %v1990_v36 = vld [vmem:[#allocation2 + $0x2f4] sm:$0xf0]  ;;  %v1372_v45 = vor.u32 %v1909_v27, %v1369_v29  ;;  %v1376_v49 = vor.u32 %v1912_v31, %v1375_v30  ;;  %vm674_vm0 = vcmask 130048   ;;  %vm1300_vm1 = vcmask 80896  }
  0x24   :  { %711 = vmatpush.bf16.msra.mxu2 %v1456_v6  ;;  %v1687_v34 = vld [vmem:[#allocation2 + $0x2f0] sm:$0xf]  ;;  %v1695_v37 = vld [vmem:[#allocation2 + $0x300] sm:$0xf]  ;;  %v1992_v38 = vld [vmem:[#allocation2 + $0x304] sm:$0xf0]  ;;  %v2170_v54 = vpack.c.bf16 %v68_v33, %v61_v32 }
  0x25   :  { %725 = vmatpush.bf16.msra.mxu3 %v1520_v7  ;;  %v1925_v41 = vld [vmem:[#allocation2 + $0xf4] sm:$0xf]  ;;  %v1433_v42 = vld [vmem:[#allocation2 + $0xf8] sm:$0xf0]  ;;  %v59_v43 = vld [vmem:[%s2435_s0] sm:$0xff]  ;;  %v1696_v50 = vor.u32 %v1992_v38, %v1695_v37  ;;  %v1688_v55 = vor.u32 %v1990_v36, %v1687_v34 }
  0x26   :  { %697 = vmatpush.bf16.msra.mxu1 %v1392_v11  ;;  %v66_v46 = vld [vmem:[%s2435_s0 + $0x38] sm:$0xff]  ;;  %v69_v48 = vld [vmem:[%s2435_s0 + $0x50] sm:$0xff]  ;;  %v1615_v51 = vld [vmem:[#allocation2 + $0x260] sm:$0xf]  ;;  %v1436_v59 = vor.u32 %v1925_v41, %v1433_v42 }
  0x27   :  { %684 = vmatpush.bf16.msra.mxu0 %v1320_v18  ;;  %v62_v47 = vld [vmem:[%s2435_s0 + $0x18] sm:$0xff]  ;;  %v1972_v52 = vld [vmem:[#allocation2 + $0x264] sm:$0xf0]  ;;  %v1907_v53 = vld [vmem:[#allocation2 + $0x64] sm:$0xf]  ;;  %v2178_v60 = vpack.c.bf16 %v66_v46, %v59_v43 }
  0x28   :  { %712 = vmatpush.bf16.msra.mxu2 %v1448_v23  ;;  %v1361_v56 = vld [vmem:[#allocation2 + $0x68] sm:$0xf0]  ;;  %v67_v58 = vld [vmem:[%s2435_s0 + $0x40] sm:$0xff]  ;;  %v1988_v62 = vld [vmem:[#allocation2 + $0x2e4] sm:$0xf0]  ;;  %v2180_v63 = vpack.c.bf16 %v69_v48, %v62_v47  ;;  %v1616_v0 = vor.u32 %v1972_v52, %v1615_v51 }
  0x29   :  { %726 = vmatpush.bf16.msra.mxu3 %v1512_v24  ;;  %v60_v57 = vld [vmem:[%s2435_s0 + $0x8] sm:$0xff]  ;;  %v1679_v61 = vld [vmem:[#allocation2 + $0x2e0] sm:$0xf]  ;;  %v1923_v1 = vld [vmem:[#allocation2 + $0xe4] sm:$0xf]  ;;  %v1364_v3 = vor.u32 %v1907_v53, %v1361_v56 }
  0x2a   :  { %698 = vmatpush.bf16.msra.mxu1 %v1384_v28  ;;  %v1425_v2 = vld [vmem:[#allocation2 + $0xe8] sm:$0xf0]  ;;  %v2182_v4 = vpack.c.bf16 %v67_v58, %v60_v57  ;;  %v1607_v5 = vld [vmem:[#allocation2 + $0x250] sm:$0xf]  ;;  %v1970_v6 = vld [vmem:[#allocation2 + $0x254] sm:$0xf0]  ;;  %v1680_v7 = vor.u32 %v1988_v62, %v1679_v61 }
  0x2b   :  { %685 = vmatpush.bf16.msra.mxu0 %v1312_v35  ;;  %v1905_v8 = vld [vmem:[#allocation2 + $0x54] sm:$0xf]  ;;  %v1353_v9 = vld [vmem:[#allocation2 + $0x58] sm:$0xf0]  ;;  %v1428_v10 = vor.u32 %v1923_v1, %v1425_v2  ;;  %v1671_v11 = vld [vmem:[#allocation2 + $0x2d0] sm:$0xf]  ;;  %v1608_v13 = vor.u32 %v1970_v6, %v1607_v5 }
  0x2c   :  { %713 = vmatpush.bf16.msra.mxu2 %v1440_v39  ;;  %v1986_v12 = vld [vmem:[#allocation2 + $0x2d4] sm:$0xf0]  ;;  %v1921_v14 = vld [vmem:[#allocation2 + $0xd4] sm:$0xf]  ;;  %v1417_v15 = vld [vmem:[#allocation2 + $0xd8] sm:$0xf0]  ;;  %v1356_v16 = vor.u32 %v1905_v8, %v1353_v9 }
  0x2d   :  { %727 = vmatpush.bf16.msra.mxu3 %v1504_v40  ;;  %v1599_v17 = vld [vmem:[#allocation2 + $0x240] sm:$0xf]  ;;  %v1968_v18 = vld [vmem:[#allocation2 + $0x244] sm:$0xf0]  ;;  %v1672_v19 = vor.u32 %v1986_v12, %v1671_v11  ;;  %v1903_v20 = vld [vmem:[#allocation2 + $0x44] sm:$0xf]  ;;  %v1420_v22 = vor.u32 %v1921_v14, %v1417_v15 }
  0x2e   :  { %699 = vmatpush.bf16.msra.mxu1 %v1376_v49  ;;  %686 = vmatmul.bf16.vlgmr.msra.gmra.mxu0 %v2178_v60  ;;  %v1345_v21 = vld [vmem:[#allocation2 + $0x48] sm:$0xf0]  ;;  %v1663_v23 = vld [vmem:[#allocation2 + $0x2c0] sm:$0xf]  ;;  %v1984_v24 = vld [vmem:[#allocation2 + $0x2c4] sm:$0xf0]  ;;  %v1600_v25 = vor.u32 %v1968_v18, %v1599_v17 }
  0x2f   :  { %734 = vmatpush.bf16.msrb.mxu0 %v1624_v44  ;;  %714 = vmatmul.bf16.vlgmr.msra.gmra.mxu2 %v2170_v54  ;;  %v1919_v26 = vld [vmem:[#allocation2 + $0xc4] sm:$0xf]  ;;  %v1409_v27 = vld [vmem:[#allocation2 + $0xc8] sm:$0xf0]  ;;  %v1348_v28 = vor.u32 %v1903_v20, %v1345_v21  ;;  %v1591_v29 = vld [vmem:[#allocation2 + $0x230] sm:$0xf]  ;;  %v1664_v31 = vor.u32 %v1984_v24, %v1663_v23 }
  0x30   :  { %769 = vmatpush.bf16.msrb.mxu2 %v1696_v50  ;;  %728 = vmatmul.bf16.vlgmr.msra.gmra.mxu3 %v2180_v63  ;;  %v1966_v30 = vld [vmem:[#allocation2 + $0x234] sm:$0xf0]  ;;  %v1901_v32 = vld [vmem:[#allocation2 + $0x34] sm:$0xf]  ;;  %v1337_v33 = vld [vmem:[#allocation2 + $0x38] sm:$0xf0]  ;;  %v1412_v35 = vor.u32 %v1919_v26, %v1409_v27 }
  0x31   :  { %776 = vmatpush.bf16.msrb.mxu3 %v1372_v45  ;;  %700 = vmatmul.bf16.vlgmr.msra.gmra.mxu1 %v2182_v4  ;;  %v1655_v34 = vld [vmem:[#allocation2 + $0x2b0] sm:$0xf]  ;;  %v1982_v36 = vld [vmem:[#allocation2 + $0x2b4] sm:$0xf0]  ;;  %v72_v38 = vld [vmem:[%s2435_s0 + $0x68] sm:$0xff]  ;;  %v1592_v39 = vor.u32 %v1966_v30, %v1591_v29  ;;  %v1340_v42 = vor.u32 %v1901_v32, %v1337_v33 }
  0x32   :  { %748 = vmatpush.bf16.msrb.mxu1 %v1688_v55  ;;  %v65_v37 = vld [vmem:[%s2435_s0 + $0x30] sm:$0xff]  ;;  %v1401_v41 = vld [vmem:[#allocation2 + $0xb8] sm:$0xf0]  ;;  %v1583_v43 = vld [vmem:[#allocation2 + $0x220] sm:$0xf]  ;;  %v1656_v45 = vor.u32 %v1982_v36, %v1655_v34 }
  0x33   :  { %735 = vmatpush.bf16.msrb.mxu0 %v1616_v0  ;;  %v1917_v40 = vld [vmem:[#allocation2 + $0xb4] sm:$0xf]  ;;  %v1964_v44 = vld [vmem:[#allocation2 + $0x224] sm:$0xf0]  ;;  %v1899_v46 = vld [vmem:[#allocation2 + $0x24] sm:$0xf]  ;;  %v2194_v48 = vpack.c.bf16 %v72_v38, %v65_v37 }
  0x34   :  { %790 = vmatpush.bf16.msra.mxu2 %v1436_v59  ;;  %v1329_v47 = vld [vmem:[#allocation2 + $0x28] sm:$0xf0]  ;;  %v1404_v49 = vor.u32 %v1917_v40, %v1401_v41  ;;  %v1647_v50 = vld [vmem:[#allocation2 + $0x2a0] sm:$0xf]  ;;  %v1980_v51 = vld [vmem:[#allocation2 + $0x2a4] sm:$0xf0]  ;;  %v1584_v52 = vor.u32 %v1964_v44, %v1583_v43 }
  0x35   :  { %777 = vmatpush.bf16.msrb.mxu3 %v1364_v3  ;;  %v1915_v53 = vld [vmem:[#allocation2 + $0xa4] sm:$0xf]  ;;  %v1393_v55 = vld [vmem:[#allocation2 + $0xa8] sm:$0xf0]  ;;  %v1332_v56 = vor.u32 %v1899_v46, %v1329_v47  ;;  %v1575_v57 = vld [vmem:[#allocation2 + $0x210] sm:$0xf]  ;;  %v1648_v61 = vor.u32 %v1980_v51, %v1647_v50 }
  0x36   :  { %749 = vmatpush.bf16.msrb.mxu1 %v1680_v7  ;;  %v1962_v58 = vld [vmem:[#allocation2 + $0x214] sm:$0xf0]  ;;  %v1897_v59 = vld [vmem:[#allocation2 + $0x14] sm:$0xf]  ;;  %v1321_v62 = vld [vmem:[#allocation2 + $0x18] sm:$0xf0]  ;;  %v1396_v2 = vor.u32 %v1915_v53, %v1393_v55 }
  0x37   :  { %736 = vmatpush.bf16.msrb.mxu0 %v1608_v13  ;;  %v1639_v0 = vld [vmem:[#allocation2 + $0x290] sm:$0xf]  ;;  %v1978_v1 = vld [vmem:[#allocation2 + $0x294] sm:$0xf0]  ;;  %v1913_v3 = vld [vmem:[#allocation2 + $0x94] sm:$0xf]  ;;  %v1576_v7 = vor.u32 %v1962_v58, %v1575_v57  ;;  %v1324_v11 = vor.u32 %v1897_v59, %v1321_v62 }
  0x38   :  { %791 = vmatpush.bf16.msra.mxu2 %v1428_v10  ;;  %v1385_v5 = vld [vmem:[#allocation2 + $0x98] sm:$0xf0]  ;;  %v1567_v6 = vld [vmem:[#allocation2 + $0x200] sm:$0xf]  ;;  %v1960_v8 = vld [vmem:[#allocation2 + $0x204] sm:$0xf0]  ;;  %v1640_v15 = vor.u32 %v1978_v1, %v1639_v0 }
  0x39   :  { %778 = vmatpush.bf16.msrb.mxu3 %v1356_v16  ;;  %v1895_v9 = vld [vmem:[#allocation2 + $0x4] sm:$0xf]  ;;  %v1313_v10 = vld [vmem:[#allocation2 + $0x8] sm:$0xf0]  ;;  %v1941_v12 = vld [vmem:[#allocation2 + $0x174] sm:$0xf]  ;;  %v1568_v23 = vor.u32 %v1960_v8, %v1567_v6 }
  0x3a   :  { %750 = vmatpush.bf16.msrb.mxu1 %v1672_v19  ;;  %v1497_v13 = vld [vmem:[#allocation2 + $0x178] sm:$0xf0]  ;;  %v1973_v14 = vld [vmem:[#allocation2 + $0x274] sm:$0xf]  ;;  %v1631_v17 = vld [vmem:[#allocation2 + $0x280] sm:$0xf]  ;;  %v1388_v19 = vor.u32 %v1913_v3, %v1385_v5  ;;  %v1316_v27 = vor.u32 %v1895_v9, %v1313_v10 }
  0x3b   :  { %737 = vmatpush.bf16.msrb.mxu0 %v1600_v25  ;;  %v1625_v16 = vld [vmem:[#allocation2 + $0x278] sm:$0xf0]  ;;  %v1976_v18 = vld [vmem:[#allocation2 + $0x284] sm:$0xf0]  ;;  %v63_v20 = vld [vmem:[%s2435_s0 + $0x20] sm:$0xff] }
  0x3c   :  { %792 = vmatpush.bf16.msra.mxu2 %v1420_v22  ;;  %v70_v21 = vld [vmem:[%s2435_s0 + $0x58] sm:$0xff]  ;;  %v1911_v22 = vld [vmem:[#allocation2 + $0x84] sm:$0xf]  ;;  %v1377_v24 = vld [vmem:[#allocation2 + $0x88] sm:$0xf0]  ;;  %v1628_v32 = vor.u32 %v1973_v14, %v1625_v16  ;;  %v1632_v33 = vor.u32 %v1976_v18, %v1631_v17 }
  0x3d   :  { %779 = vmatpush.bf16.msrb.mxu3 %v1348_v28  ;;  %v1957_v25 = vld [vmem:[#allocation2 + $0x1f4] sm:$0xf]  ;;  %v1561_v26 = vld [vmem:[#allocation2 + $0x1f8] sm:$0xf0]  ;;  %v1500_v28 = vor.u32 %v1941_v12, %v1497_v13  ;;  %v71_v34 = vld [vmem:[%s2435_s0 + $0x60] sm:$0xff]  ;;  %v2210_v37 = vpack.c.bf16 %v70_v21, %v63_v20  ;;  %v1380_v38 = vor.u32 %v1911_v22, %v1377_v24 }
  0x3e   :  { %751 = vmatpush.bf16.msrb.mxu1 %v1664_v31  ;;  %v1989_v29 = vld [vmem:[#allocation2 + $0x2f4] sm:$0xf]  ;;  %v1689_v30 = vld [vmem:[#allocation2 + $0x2f8] sm:$0xf0]  ;;  %v64_v31 = vld [vmem:[%s2435_s0 + $0x28] sm:$0xff]  ;;  %v1564_v41 = vor.u32 %v1957_v25, %v1561_v26 }
  0x3f   :  { %738 = vmatpush.bf16.msrb.mxu0 %v1592_v39  ;;  %1701 = vmatmul.msk.bf16.vlgmr.msrb.gmra.mxu2 %vm674_vm0, %v2194_v48  ;;  %v1489_v36 = vld [vmem:[#allocation2 + $0x168] sm:$0xf0]  ;;  %v1971_v39 = vld [vmem:[#allocation2 + $0x264] sm:$0xf]  ;;  %v2212_v44 = vpack.c.bf16 %v71_v34, %v64_v31  ;;  %v1937_v51 = vld [vmem:[#allocation2 + $0x154] sm:$0xf] }
  0x40   :  { %793 = vmatpush.bf16.msra.mxu2 %v1412_v35  ;;  %v1939_v35 = vld [vmem:[#allocation2 + $0x164] sm:$0xf]  ;;  %v1617_v40 = vld [vmem:[#allocation2 + $0x268] sm:$0xf0]  ;;  %v1969_v53 = vld [vmem:[#allocation2 + $0x254] sm:$0xf] }
  0x41   :  { %780 = vmatpush.bf16.msrb.mxu3 %v1340_v42  ;;  %v1692_v42 = vor.u32 %v1989_v29, %v1689_v30  ;;  %v1955_v43 = vld [vmem:[#allocation2 + $0x1e4] sm:$0xf]  ;;  %v1553_v46 = vld [vmem:[#allocation2 + $0x1e8] sm:$0xf0]  ;;  %v1620_v50 = vor.u32 %v1971_v39, %v1617_v40  ;;  %v1609_v55 = vld [vmem:[#allocation2 + $0x258] sm:$0xf0] }
  0x42   :  { %752 = vmatpush.bf16.msrb.mxu1 %v1656_v45  ;;  %v1492_v45 = vor.u32 %v1939_v35, %v1489_v36  ;;  %v1987_v47 = vld [vmem:[#allocation2 + $0x2e4] sm:$0xf]  ;;  %v1953_v58 = vld [vmem:[#allocation2 + $0x1d4] sm:$0xf]  ;;  %v1673_v0 = vld [vmem:[#allocation2 + $0x2d8] sm:$0xf0]  ;;  %v1612_v1 = vor.u32 %v1969_v53, %v1609_v55 }
  0x43   :  { %739 = vmatpush.bf16.msrb.mxu0 %v1584_v52  ;;  %v1481_v52 = vld [vmem:[#allocation2 + $0x158] sm:$0xf0]  ;;  %v1985_v62 = vld [vmem:[#allocation2 + $0x2d4] sm:$0xf]  ;;  %v1473_v3 = vld [vmem:[#allocation2 + $0x148] sm:$0xf0] }
  0x44   :  { %794 = vmatpush.bf16.msra.mxu2 %v1404_v49  ;;  %v1681_v49 = vld [vmem:[#allocation2 + $0x2e8] sm:$0xf0]  ;;  %v1484_v59 = vor.u32 %v1937_v51, %v1481_v52  ;;  %v1967_v5 = vld [vmem:[#allocation2 + $0x244] sm:$0xf]  ;;  %v1676_v8 = vor.u32 %v1985_v62, %v1673_v0  ;;  %v1465_v16 = vld [vmem:[#allocation2 + $0x138] sm:$0xf0] }
  0x45   :  { %781 = vmatpush.bf16.msrb.mxu3 %v1332_v56  ;;  %v1556_v56 = vor.u32 %v1955_v43, %v1553_v46  ;;  %v1684_v57 = vor.u32 %v1987_v47, %v1681_v49  ;;  %v1601_v6 = vld [vmem:[#allocation2 + $0x248] sm:$0xf0]  ;;  %v1951_v9 = vld [vmem:[#allocation2 + $0x1c4] sm:$0xf]  ;;  %v1965_v17 = vld [vmem:[#allocation2 + $0x234] sm:$0xf] }
  0x46   :  { %753 = vmatpush.bf16.msrb.mxu1 %v1648_v61  ;;  %v1545_v61 = vld [vmem:[#allocation2 + $0x1d8] sm:$0xf0]  ;;  %v1537_v10 = vld [vmem:[#allocation2 + $0x1c8] sm:$0xf0]  ;;  %v1983_v12 = vld [vmem:[#allocation2 + $0x2c4] sm:$0xf]  ;;  %v1604_v14 = vor.u32 %v1967_v5, %v1601_v6 }
  0x47   :  { %740 = vmatpush.bf16.msrb.mxu0 %v1576_v7  ;;  %v1548_v7 = vor.u32 %v1953_v58, %v1545_v61  ;;  %v1665_v13 = vld [vmem:[#allocation2 + $0x2c8] sm:$0xf0]  ;;  %v1540_v18 = vor.u32 %v1951_v9, %v1537_v10  ;;  %v1529_v21 = vld [vmem:[#allocation2 + $0x1b8] sm:$0xf0]  ;;  %v1981_v22 = vld [vmem:[#allocation2 + $0x2b4] sm:$0xf] }
  0x48   :  { %795 = vmatpush.bf16.msra.mxu2 %v1396_v2  ;;  %v1935_v2 = vld [vmem:[#allocation2 + $0x144] sm:$0xf]  ;;  %v1457_v26 = vld [vmem:[#allocation2 + $0x128] sm:$0xf0]  ;;  %v1449_v39 = vld [vmem:[#allocation2 + $0x118] sm:$0xf0] }
  0x49   :  { %782 = vmatpush.bf16.msrb.mxu3 %v1324_v11  ;;  %v1476_v11 = vor.u32 %v1935_v2, %v1473_v3  ;;  %v1931_v25 = vld [vmem:[#allocation2 + $0x124] sm:$0xf]  ;;  %v1649_v35 = vld [vmem:[#allocation2 + $0x2a8] sm:$0xf0]  ;;  %v1961_v40 = vld [vmem:[#allocation2 + $0x214] sm:$0xf] }
  0x4a   :  { %754 = vmatpush.bf16.msrb.mxu1 %v1640_v15  ;;  %v1933_v15 = vld [vmem:[#allocation2 + $0x134] sm:$0xf]  ;;  %v1947_v31 = vld [vmem:[#allocation2 + $0x1a4] sm:$0xf]  ;;  %v1513_v47 = vld [vmem:[#allocation2 + $0x198] sm:$0xf0] }
  0x4b   :  { %741 = vmatpush.bf16.msrb.mxu0 %v1568_v23  ;;  %v1468_v20 = vor.u32 %v1933_v15, %v1465_v16  ;;  %v1657_v23 = vld [vmem:[#allocation2 + $0x2b8] sm:$0xf0]  ;;  %v1979_v34 = vld [vmem:[#allocation2 + $0x2a4] sm:$0xf]  ;;  %v1977_v49 = vld [vmem:[#allocation2 + $0x294] sm:$0xf] }
  0x4c   :  { %796 = vmatpush.bf16.msra.mxu2 %v1388_v19  ;;  %v1949_v19 = vld [vmem:[#allocation2 + $0x1b4] sm:$0xf]  ;;  %v1660_v30 = vor.u32 %v1981_v22, %v1657_v23  ;;  %v1652_v43 = vor.u32 %v1979_v34, %v1649_v35  ;;  %v1927_v52 = vld [vmem:[#allocation2 + $0x104] sm:$0xf]  ;;  %v1441_v53 = vld [vmem:[#allocation2 + $0x108] sm:$0xf0] }
  0x4d   :  { %783 = vmatpush.bf16.msrb.mxu3 %v1316_v27  ;;  %v1963_v27 = vld [vmem:[#allocation2 + $0x224] sm:$0xf]  ;;  %v1532_v29 = vor.u32 %v1949_v19, %v1529_v21  ;;  %v1697_v58 = vld [vmem:[#allocation2 + $0x308] sm:$0xf0]  ;;  %v1444_v62 = vor.u32 %v1927_v52, %v1441_v53  ;;  %v1761_v9 = vld [vmem:[%s2438_s3 + $0x70] sm:$0xf] }
  0x4e   :  { %755 = vmatpush.bf16.msrb.mxu1 %v1632_v33  ;;  %742 = vmatmul.bf16.vlgmr.msrb.gmra.mxu0 %v2210_v37  ;;  %v1521_v33 = vld [vmem:[#allocation2 + $0x1a8] sm:$0xf0]  ;;  %v1959_v55 = vld [vmem:[#allocation2 + $0x204] sm:$0xf]  ;;  %v2008_v10 = vld [vmem:[%s2438_s3 + $0x74] sm:$0xf0] }
  0x4f   :  { %804 = vmatpush.bf16.msra.mxu0 %v1500_v28  ;;  %v1585_v28 = vld [vmem:[#allocation2 + $0x228] sm:$0xf0]  ;;  %v1943_v0 = vld [vmem:[#allocation2 + $0x184] sm:$0xf]  ;;  %v1745_v16 = vld [vmem:[%s2438_s3 + $0x50] sm:$0xf] }
  0x50   :  { %797 = vmatpush.bf16.msra.mxu2 %v1380_v38  ;;  %784 = vmatmul.bf16.vlgmr.msrb.gmra.mxu3 %v2178_v60  ;;  %v1668_v60 = vor.u32 %v1983_v12, %v1665_v13  ;;  %v1588_v36 = vor.u32 %v1963_v27, %v1585_v28  ;;  %v1929_v38 = vld [vmem:[#allocation2 + $0x114] sm:$0xf]  ;;  %v1975_v3 = vld [vmem:[#allocation2 + $0x284] sm:$0xf]  ;;  %v1633_v5 = vld [vmem:[#allocation2 + $0x288] sm:$0xf0] }
  0x51   :  { %832 = vmatpush.bf16.msra.mxu3 %v1628_v32  ;;  %756 = vmatmul.bf16.vlgmr.msrb.gmra.mxu1 %v2212_v44  ;;  %v1460_v32 = vor.u32 %v1931_v25, %v1457_v26  ;;  %v1452_v46 = vor.u32 %v1929_v38, %v1449_v39  ;;  %v2005_v12 = vld [vmem:[%s2438_s3 + $0x64] sm:$0xf]  ;;  %v2002_v21 = vld [vmem:[%s2438_s3 + $0x44] sm:$0xf0]  ;;  %v1729_v26 = vld [vmem:[%s2438_s3 + $0x30] sm:$0xf] }
  0x52   :  { %818 = vmatpush.bf16.msra.mxu1 %v1564_v41  ;;  %v1577_v41 = vld [vmem:[#allocation2 + $0x218] sm:$0xf0]  ;;  %v2001_v22 = vld [vmem:[%s2438_s3 + $0x44] sm:$0xf]  ;;  %v2000_v27 = vld [vmem:[%s2438_s3 + $0x34] sm:$0xf0] }
  0x53   :  { %805 = vmatpush.bf16.msra.mxu0 %v1492_v45  ;;  %798 = vmatmul.bf16.vlgmr.msra.gmra.mxu2 %v2182_v4  ;;  %v1593_v4 = vld [vmem:[#allocation2 + $0x238] sm:$0xf0]  ;;  %v1945_v45 = vld [vmem:[#allocation2 + $0x194] sm:$0xf]  ;;  %v1580_v51 = vor.u32 %v1961_v40, %v1577_v41  ;;  %v1997_v34 = vld [vmem:[%s2438_s3 + $0x24] sm:$0xf] }
  0x54   :  { %846 = vmatpush.bf16.msrb.mxu2 %v1692_v42  ;;  %v1596_v24 = vor.u32 %v1965_v17, %v1593_v4  ;;  %v1524_v42 = vor.u32 %v1947_v31, %v1521_v33  ;;  %v2004_v17 = vld [vmem:[%s2438_s3 + $0x54] sm:$0xf0]  ;;  %v2003_v4 = vld [vmem:[%s2438_s3 + $0x54] sm:$0xf]  ;;  %v1998_v33 = vld [vmem:[%s2438_s3 + $0x24] sm:$0xf0] }
  0x55   :  { %833 = vmatpush.bf16.msra.mxu3 %v1620_v50  ;;  %v1641_v50 = vld [vmem:[#allocation2 + $0x298] sm:$0xf0]  ;;  %v1999_v28 = vld [vmem:[%s2438_s3 + $0x34] sm:$0xf]  ;;  %v1713_v39 = vld [vmem:[%s2438_s3 + $0x10] sm:$0xf] }
  0x56   :  { %819 = vmatpush.bf16.msra.mxu1 %v1556_v56  ;;  %v1569_v56 = vld [vmem:[#allocation2 + $0x208] sm:$0xf0]  ;;  %v1644_v61 = vor.u32 %v1977_v49, %v1641_v50  ;;  %v1996_v40 = vld [vmem:[%s2438_s3 + $0x14] sm:$0xf0]  ;;  %v1995_v41 = vld [vmem:[%s2438_s3 + $0x14] sm:$0xf] }
  0x57   :  { %806 = vmatpush.bf16.msra.mxu0 %v1484_v59  ;;  %v1516_v59 = vor.u32 %v1945_v45, %v1513_v47  ;;  %v1572_v2 = vor.u32 %v1959_v55, %v1569_v56  ;;  %v1705_v50 = vld [vmem:[%s2438_s3] sm:$0xf]  ;;  %v1993_v52 = vld [vmem:[%s2438_s3 + $0x4] sm:$0xf]  ;;  %v1707_v55 = vld [vmem:[%s2438_s3 + $0x8] sm:$0xf0] }
  0x58   :  { %847 = vmatpush.bf16.msrb.mxu2 %v1684_v57  ;;  %v1991_v57 = vld [vmem:[#allocation2 + $0x304] sm:$0xf] }
  0x59   :  { %834 = vmatpush.bf16.msra.mxu3 %v1612_v1  ;;  %v1505_v1 = vld [vmem:[#allocation2 + $0x188] sm:$0xf0]  ;;  %v1700_v6 = vor.u32 %v1991_v57, %v1697_v58  ;;  %v1710_v57 = vor.u32 %v1993_v52, %v1707_v55  ;;  %v1785_v52 = vld [vmem:[%s2438_s3 + $0xa0] sm:$0xf] }
  0x5a   :  { %820 = vmatpush.bf16.msra.mxu1 %v1548_v7  ;;  %v1508_v7 = vor.u32 %v1943_v0, %v1505_v1 }
  0x5b   :  { %807 = vmatpush.bf16.msra.mxu0 %v1476_v11  ;;  %v2006_v11 = vld [vmem:[%s2438_s3 + $0x64] sm:$0xf0] }
  0x5c   :  { %848 = vmatpush.bf16.msrb.mxu2 %v1676_v8  ;;  %v1636_v8 = vor.u32 %v1975_v3, %v1633_v5  ;;  %v1825_v5 = vld [vmem:[%s2438_s3 + $0xf0] sm:$0xf] }
  0x5d   :  { %835 = vmatpush.bf16.msra.mxu3 %v1604_v14  ;;  %v1755_v14 = vld [vmem:[%s2438_s3 + $0x68] sm:$0xf0] }
  0x5e   :  { %821 = vmatpush.bf16.msra.mxu1 %v1540_v18  ;;  %v1758_v15 = vor.u32 %v2005_v12, %v1755_v14  ;;  %v1747_v18 = vld [vmem:[%s2438_s3 + $0x58] sm:$0xf0]  ;;  %v1819_v14 = vld [vmem:[%s2438_s3 + $0xe8] sm:$0xf0] }
  0x5f   :  { %808 = vmatpush.bf16.msra.mxu0 %v1468_v20  ;;  %v1750_v19 = vor.u32 %v2003_v4, %v1747_v18  ;;  %v1737_v20 = vld [vmem:[%s2438_s3 + $0x40] sm:$0xf] }
  0x60   :  { %849 = vmatpush.bf16.msrb.mxu2 %v1668_v60  ;;  %v1746_v60 = vor.u32 %v2004_v17, %v1745_v16  ;;  %v1738_v23 = vor.u32 %v2002_v21, %v1737_v20  ;;  %v2019_v20 = vld [vmem:[%s2438_s3 + $0xd4] sm:$0xf] }
  0x61   :  { %836 = vmatpush.bf16.msra.mxu3 %v1596_v24  ;;  %v1739_v24 = vld [vmem:[%s2438_s3 + $0x48] sm:$0xf0] }
  0x62   :  { %822 = vmatpush.bf16.msra.mxu1 %v1532_v29  ;;  %v1742_v25 = vor.u32 %v2001_v22, %v1739_v24  ;;  %v1730_v29 = vor.u32 %v2000_v27, %v1729_v26  ;;  %v1801_v27 = vld [vmem:[%s2438_s3 + $0xc0] sm:$0xf] }
  0x63   :  { %809 = vmatpush.bf16.msra.mxu0 %v1460_v32  ;;  %v1721_v32 = vld [vmem:[%s2438_s3 + $0x20] sm:$0xf] }
  0x64   :  { %850 = vmatpush.bf16.msrb.mxu2 %v1660_v30  ;;  %v1731_v30 = vld [vmem:[%s2438_s3 + $0x38] sm:$0xf0]  ;;  %v1722_v35 = vor.u32 %v1998_v33, %v1721_v32  ;;  %v1803_v32 = vld [vmem:[%s2438_s3 + $0xc8] sm:$0xf0] }
  0x65   :  { %837 = vmatpush.bf16.msra.mxu3 %v1588_v36  ;;  %v1734_v31 = vor.u32 %v1999_v28, %v1731_v30  ;;  %v1723_v36 = vld [vmem:[%s2438_s3 + $0x28] sm:$0xf0]  ;;  %v2018_v28 = vld [vmem:[%s2438_s3 + $0xc4] sm:$0xf0] }
  0x66   :  { %823 = vmatpush.bf16.msra.mxu1 %v1524_v42  ;;  %v1726_v38 = vor.u32 %v1997_v34, %v1723_v36  ;;  %v1714_v42 = vor.u32 %v1996_v40, %v1713_v39  ;;  %v1802_v30 = vor.u32 %v2018_v28, %v1801_v27  ;;  %v1793_v40 = vld [vmem:[%s2438_s3 + $0xb0] sm:$0xf] }
  0x67   :  { %810 = vmatpush.bf16.msra.mxu0 %v1452_v46  ;;  %v2311_v46 = vld [vmem:[%s2437_s2] sm:$0x3] }
  0x68   :  { %851 = vmatpush.bf16.msrb.mxu2 %v1652_v43  ;;  %v1715_v43 = vld [vmem:[%s2438_s3 + $0x18] sm:$0xf0]  ;;  %v180_v58 = vperm.slane %v2311_v46, 0 }
  0x69   :  { %838 = vmatpush.bf16.msra.mxu3 %v1580_v51  ;;  %v1718_v45 = vor.u32 %v1995_v41, %v1715_v43  ;;  %v1994_v51 = vld [vmem:[%s2438_s3 + $0x4] sm:$0xf0]  ;;  %v2016_v41 = vld [vmem:[%s2438_s3 + $0xb4] sm:$0xf0] }
  0x6a   :  { %824 = vmatpush.bf16.msra.mxu1 %v1516_v59  ;;  %v1706_v53 = vor.u32 %v1994_v51, %v1705_v50  ;;  %v1794_v43 = vor.u32 %v2016_v41, %v1793_v40  ;;  %v2030_v40 = vld [vmem:[#allocation4 + $0x28] sm:$0xff] }
  0x6b   :  { %811 = vmatpush.bf16.msra.mxu0 %v1444_v62  ;;  %v2038_v41 = vld [vmem:[#allocation4 + $0x68] sm:$0xff] }
  0x6c   :  { %852 = vmatpush.bf16.msrb.mxu2 %v1644_v61 }
  0x6d   :  { %839 = vmatpush.bf16.msra.mxu3 %v1572_v2 }
  0x6e   :  { %825 = vmatpush.bf16.msra.mxu1 %v1508_v7  ;;  %812 = vmatmul.bf16.vlgmr.msra.gmra.mxu0 %v2170_v54  ;;  %v2007_v54 = vld [vmem:[%s2438_s3 + $0x74] sm:$0xf] }
  0x6f   :  { %867 = vmatpush.bf16.msrb.mxu0 %v1700_v6  ;;  %v2024_v6 = vld [vmem:[%s2438_s3 + $0xf4] sm:$0xf0]  ;;  %v2023_v7 = vld [vmem:[%s2438_s3 + $0xf4] sm:$0xf] }
  0x70   :  { %840 = vmatmul.bf16.vlgmr.msra.gmra.mxu3 %v2210_v37  ;;  %853 = vmatpush.bf16.msrb.mxu2 %v1636_v8  ;;  %v1762_v37 = vor.u32 %v2008_v10, %v1761_v9  ;;  %v1826_v8 = vor.u32 %v2024_v6, %v1825_v5  ;;  %v1827_v9 = vld [vmem:[%s2438_s3 + $0xf8] sm:$0xf0] }
  0x71   :  { %826 = vmatmul.bf16.vlgmr.msra.gmra.mxu1 %v2180_v63  ;;  %v1763_v63 = vld [vmem:[%s2438_s3 + $0x78] sm:$0xf0] }
  0x72   :  { %1078 = vmatpush.bf16.msrb.mxu1 %v1762_v37  ;;  %1092 = vmatpush.bf16.msrb.mxu3 %v1826_v8  ;;  %v2010_v8 = vld [vmem:[%s2438_s3 + $0x84] sm:$0xf0] }
  0x73   :  { %854 = vmatmul.bf16.vlgmr.msrb.gmra.mxu2 %v2212_v44  ;;  %v1766_v44 = vor.u32 %v2007_v54, %v1763_v63  ;;  %v1830_v54 = vor.u32 %v2023_v7, %v1827_v9  ;;  %v1817_v63 = vld [vmem:[%s2438_s3 + $0xe0] sm:$0xf]  ;;  %v2009_v9 = vld [vmem:[%s2438_s3 + $0x84] sm:$0xf] }
  0x74   :  { %v1769_v7 = vld [vmem:[%s2438_s3 + $0x80] sm:$0xf] }
  0x75   :  { %1106 = vmatpush.bf16.msra.mxu0 %v1766_v44  ;;  %1120 = vmatpush.bf16.msra.mxu2 %v1830_v54  ;;  %v2022_v44 = vld [vmem:[%s2438_s3 + $0xe4] sm:$0xf0]  ;;  %v1771_v54 = vld [vmem:[%s2438_s3 + $0x88] sm:$0xf0] }
  0x79   :  { %1107 = vmatpush.bf16.msra.mxu0 %v1758_v15 }
  0x7d   :  { %1108 = vmatpush.bf16.msra.mxu0 %v1750_v19  ;;  %v2020_v19 = vld [vmem:[%s2438_s3 + $0xd4] sm:$0xf0] }
  0x7e   :  { %1702 = vmatmul.msk.bf16.vlgmr.msrb.gmra.mxu0 %vm674_vm0, %v2194_v48  ;;  %v1753_v48 = vld [vmem:[%s2438_s3 + $0x60] sm:$0xf] }
  0x7f   :  { %v1754_v13 = vor.u32 %v2006_v11, %v1753_v48  ;;  %v2021_v48 = vld [vmem:[%s2438_s3 + $0xe4] sm:$0xf] }
  0x80   :  { %v1822_v16 = vor.u32 %v2021_v48, %v1819_v14 }
  0x81   :  { %1079 = vmatpush.bf16.msrb.mxu1 %v1754_v13  ;;  %1109 = vmatpush.bf16.msra.mxu0 %v1742_v25  ;;  %v1818_v13 = vor.u32 %v2022_v44, %v1817_v63  ;;  %v181_v63 = vperm.slane %v2311_v46, 1 }
  0x82   :  { %1121 = vmatpush.bf16.msra.mxu2 %v1822_v16 }
  0x83   :  { %1093 = vmatpush.bf16.msrb.mxu3 %v1818_v13 }
  0x85   :  { %1080 = vmatpush.bf16.msrb.mxu1 %v1746_v60  ;;  %1110 = vmatpush.bf16.msra.mxu0 %v1734_v31  ;;  %v1809_v60 = vld [vmem:[%s2438_s3 + $0xd0] sm:$0xf]  ;;  %v2017_v31 = vld [vmem:[%s2438_s3 + $0xc4] sm:$0xf] }
  0x86   :  { %v1810_v22 = vor.u32 %v2020_v19, %v1809_v60  ;;  %v1806_v34 = vor.u32 %v2017_v31, %v1803_v32 }
  0x88   :  { %1094 = vmatpush.bf16.msrb.mxu3 %v1810_v22 }
  0x89   :  { %1081 = vmatpush.bf16.msrb.mxu1 %v1738_v23  ;;  %1111 = vmatpush.bf16.msra.mxu0 %v1726_v38  ;;  %v1811_v23 = vld [vmem:[%s2438_s3 + $0xd8] sm:$0xf0] }
  0x8a   :  { %v1814_v24 = vor.u32 %v2019_v20, %v1811_v23 }
  0x8c   :  { %1122 = vmatpush.bf16.msra.mxu2 %v1814_v24  ;;  %1095 = vmatpush.bf16.msrb.mxu3 %v1802_v30 }
  0x8d   :  { %1082 = vmatpush.bf16.msrb.mxu1 %v1730_v29  ;;  %1112 = vmatpush.bf16.msra.mxu0 %v1718_v45  ;;  %v1795_v45 = vld [vmem:[%s2438_s3 + $0xb8] sm:$0xf0] }
  0x90   :  { %1123 = vmatpush.bf16.msra.mxu2 %v1806_v34  ;;  %1096 = vmatpush.bf16.msrb.mxu3 %v1794_v43  ;;  %v2037_v43 = vld [vmem:[#allocation4 + $0x60] sm:$0xff] }
  0x91   :  { %1083 = vmatpush.bf16.msrb.mxu1 %v1722_v35  ;;  %1113 = vmatpush.bf16.msra.mxu0 %v1710_v57  ;;  %v1787_v57 = vld [vmem:[%s2438_s3 + $0xa8] sm:$0xf0] }
  0x95   :  { %1084 = vmatpush.bf16.msrb.mxu1 %v1714_v42  ;;  %v2015_v42 = vld [vmem:[%s2438_s3 + $0xb4] sm:$0xf] }
  0x99   :  { %1085 = vmatpush.bf16.msrb.mxu1 %v1706_v53  ;;  %v2014_v53 = vld [vmem:[%s2438_s3 + $0xa4] sm:$0xf0] }
  0x9a   :  { %v1786_v55 = vor.u32 %v2014_v53, %v1785_v52  ;;  %v2034_v52 = vld [vmem:[#allocation4 + $0x48] sm:$0xff]  ;;  %v2025_v53 = vld [vmem:[#allocation4] sm:$0xff] }
  0x9c   :  { %1097 = vmatpush.bf16.msrb.mxu3 %v1786_v55  ;;  %v2033_v55 = vld [vmem:[#allocation4 + $0x40] sm:$0xff] }
  0xab   :  { %v687_v47 = vpop.f32.mrf.mxu0 }
  0xac   :  { %v688_v59 = vadd.f32 %v687_v47, %v180_v58 }
  0xae   :  { %v701_v56 = vpop.f32.mrf.mxu1 }
  0xaf   :  { %v702_v0 = vadd.f32 %v701_v56, %v688_v59  ;;  %v2013_v56 = vld [vmem:[%s2438_s3 + $0xa4] sm:$0xf] }
  0xb0   :  { %v1790_v59 = vor.u32 %v2013_v56, %v1787_v57 }
  0xb2   :  { %v715_v49 = vpop.f32.mrf.mxu2 }
  0xb3   :  { %v689_v61 = vpop.f32.mrf.mxu0  ;;  %v729_v1 = vpop.f32.mrf.mxu3  ;;  %v716_v10 = vadd.f32 %v715_v49, %v702_v0  ;;  %v1798_v49 = vor.u32 %v2015_v42, %v1795_v45  ;;  %v2012_v0 = vld [vmem:[%s2438_s3 + $0x94] sm:$0xf0]  ;;  %v2029_v42 = vld [vmem:[#allocation4 + $0x20] sm:$0xff]  ;;  %v2028_v45 = vld [vmem:[#allocation4 + $0x18] sm:$0xff] }
  0xb4   :  { %v690_v3 = vadd.f32 %v689_v61, %v180_v58 }
  0xb5   :  { %v730_v15 = vadd.f32 %v729_v1, %v716_v10  ;;  %1124 = vmatpush.bf16.msra.mxu2 %v1798_v49  ;;  %v2011_v1 = vld [vmem:[%s2438_s3 + $0x94] sm:$0xf]  ;;  %v1770_v10 = vor.u32 %v2010_v8, %v1769_v7  ;;  %v2027_v49 = vld [vmem:[#allocation4 + $0x10] sm:$0xff] }
  0xb6   :  { %v703_v2 = vpop.f32.mrf.mxu1 }
  0xb7   :  { %v704_v37 = vadd.f32 %v703_v2, %v690_v3  ;;  %v1779_v3 = vld [vmem:[%s2438_s3 + $0x98] sm:$0xf0] }
  0xb8   :  { %v1782_v6 = vor.u32 %v2011_v1, %v1779_v3 }
  0xb9   :  { %1125 = vmatpush.bf16.msra.mxu2 %v1790_v59 }
  0xba   :  { %v717_v62 = vpop.f32.mrf.mxu2 }
  0xbb   :  { %v718_v4 = vadd.f32 %v717_v62, %v704_v37  ;;  %v731_v21 = vpop.f32.mrf.mxu3  ;;  %v1777_v62 = vld [vmem:[%s2438_s3 + $0x90] sm:$0xf]  ;;  %v1774_v37 = vor.u32 %v2009_v9, %v1771_v54 }
  0xbc   :  { %v1778_v2 = vor.u32 %v2012_v0, %v1777_v62 }
  0xbd   :  { %v732_v25 = vadd.f32 %v731_v21, %v718_v4  ;;  %1126 = vmatpush.bf16.msra.mxu2 %v1782_v6 }
  0xbe   :  { %1098 = vmatpush.bf16.msrb.mxu3 %v1778_v2 }
  0xc1   :  { %1127 = vmatpush.bf16.msra.mxu2 %v1774_v37 }
  0xc2   :  { %v771_v12 = vpop.f32.mrf.mxu2  ;;  %1099 = vmatpush.bf16.msrb.mxu3 %v1770_v10 }
  0xca   :  { %v773_v36 = vpop.f32.mrf.mxu2 }
  0xcb   :  { %v743_v11 = vpop.f32.mrf.mxu0 }
  0xcc   :  { %v744_v18 = vadd.f32 %v743_v11, %v730_v15 }
  0xce   :  { %v757_v17 = vpop.f32.mrf.mxu1 }
  0xcf   :  { %v758_v26 = vadd.f32 %v757_v17, %v744_v18 }
  0xd1   :  { %v772_v38 = vadd.f32 %v771_v12, %v758_v26 }
  0xd3   :  { %v745_v29 = vpop.f32.mrf.mxu0  ;;  %v874_v50 = vmax.f32 %v772_v38, 0.0  ;;  %v785_v61 = vpop.f32.mrf.mxu3  ;;  %v2031_v38 = vld [vmem:[#allocation4 + $0x30] sm:$0xff] }
  0xd4   :  { %v746_v33 = vadd.f32 %v745_v29, %v732_v25  ;;  %v786_v12 = vadd.f32 %v785_v61, %v181_v63 }
  0xd6   :  { %v759_v35 = vpop.f32.mrf.mxu1  ;;  %v799_v5 = vpop.f32.mrf.mxu2 }
  0xd7   :  { %v760_v39 = vadd.f32 %v759_v35, %v746_v33  ;;  %v800_v14 = vadd.f32 %v799_v5, %v786_v12  ;;  %v2032_v35 = vld [vmem:[#allocation4 + $0x38] sm:$0xff] }
  0xd8   :  { %1272 = vmatpush.bf16.msra.mxu1 %v2032_v35 }
  0xd9   :  { %v774_v47 = vadd.f32 %v773_v36, %v760_v39  ;;  %v2040_v36 = vld [vmem:[#allocation4 + $0x78] sm:$0xff]  ;;  %v2039_v39 = vld [vmem:[#allocation4 + $0x70] sm:$0xff] }
  0xda   :  { %1286 = vmatpush.bf16.msra.mxu3 %v2040_v36 }
  0xdb   :  { %v876_v51 = vmax.f32 %v774_v47, 0.0  ;;  %v787_v44 = vpop.f32.mrf.mxu3  ;;  %v2036_v47 = vld [vmem:[#allocation4 + $0x58] sm:$0xff] }
  0xdc   :  { %v788_v15 = vadd.f32 %v787_v44, %v181_v63  ;;  %1273 = vmatpush.bf16.msra.mxu1 %v2031_v38 }
  0xdd   :  { %v878_v58 = vpack.c.bf16 %v876_v51, %v874_v50  ;;  %v2035_v50 = vld [vmem:[#allocation4 + $0x50] sm:$0xff]  ;;  %v2026_v51 = vld [vmem:[#allocation4 + $0x8] sm:$0xff] }
  0xde   :  { %v801_v11 = vpop.f32.mrf.mxu2  ;;  %1287 = vmatpush.bf16.msra.mxu3 %v2039_v39 }
  0xdf   :  { %1086 = vmatmul.bf16.vlgmr.msrb.gmra.mxu1 %v878_v58  ;;  %1114 = vmatmul.bf16.vlgmr.msra.gmra.mxu0 %v878_v58  ;;  %v802_v18 = vadd.f32 %v801_v11, %v788_v15  ;;  %v912_v58 = vld [vmem:[%s2439_s4] sm:$0x3] }
  0xe0   :  { %1274 = vmatpush.bf16.msra.mxu1 %v2030_v40  ;;  %v914_v62 = vperm.slane %v912_v58, 0  ;;  %v915_v0 = vperm.slane %v912_v58, 1 }
  0xe2   :  { %1288 = vmatpush.bf16.msra.mxu3 %v2038_v41 }
  0xe4   :  { %1275 = vmatpush.bf16.msra.mxu1 %v2029_v42 }
  0xe6   :  { %1289 = vmatpush.bf16.msra.mxu3 %v2037_v43 }
  0xe8   :  { %1276 = vmatpush.bf16.msra.mxu1 %v2028_v45 }
  0xea   :  { %1290 = vmatpush.bf16.msra.mxu3 %v2036_v47 }
  0xeb   :  { %v813_v48 = vpop.f32.mrf.mxu0 }
  0xec   :  { %v814_v60 = vadd.f32 %v813_v48, %v800_v14  ;;  %1277 = vmatpush.bf16.msra.mxu1 %v2027_v49 }
  0xee   :  { %v827_v13 = vpop.f32.mrf.mxu1  ;;  %1291 = vmatpush.bf16.msra.mxu3 %v2035_v50 }
  0xef   :  { %v828_v21 = vadd.f32 %v827_v13, %v814_v60 }
  0xf0   :  { %1278 = vmatpush.bf16.msra.mxu1 %v2026_v51 }
  0xf2   :  { %1292 = vmatpush.bf16.msra.mxu3 %v2034_v52 }
  0xf3   :  { %v841_v16 = vpop.f32.mrf.mxu3  ;;  %v815_v17 = vpop.f32.mrf.mxu0 }
  0xf4   :  { %v816_v19 = vadd.f32 %v815_v17, %v802_v18  ;;  %v842_v24 = vadd.f32 %v841_v16, %v828_v21  ;;  %1279 = vmatpush.bf16.msra.mxu1 %v2025_v53  ;;  %v2047_v16 = vld [vmem:[%s2441_s6] ss:$0 sm:$0xff] }
  0xf6   :  { %v855_v4 = vpop.f32.mrf.mxu2  ;;  %v829_v20 = vpop.f32.mrf.mxu1  ;;  %1293 = vmatpush.bf16.msra.mxu3 %v2033_v55 }
  0xf7   :  { %v830_v46 = vadd.f32 %v829_v20, %v816_v19  ;;  %v856_v27 = vadd.f32 %v855_v4, %v842_v24 }
  0xfb   :  { %v843_v22 = vpop.f32.mrf.mxu3  ;;  %v869_v23 = vpop.f32.mrf.mxu0 }
  0xfc   :  { %v844_v25 = vadd.f32 %v843_v22, %v830_v46  ;;  %v870_v28 = vadd.f32 %v869_v23, %v856_v27 }
  0xfe   :  { %v857_v26 = vpop.f32.mrf.mxu2  ;;  %v875_v32 = vmax.f32 %v870_v28, 0.0 }
  0xff   :  { %v858_v29 = vadd.f32 %v857_v26, %v844_v25 }
 0x103   :  { %v871_v30 = vpop.f32.mrf.mxu0 }
 0x104   :  { %v872_v31 = vadd.f32 %v871_v30, %v858_v29 }
 0x106   :  { %v877_v33 = vmax.f32 %v872_v31, 0.0 }
 0x108   :  { %v879_v34 = vpack.c.bf16 %v877_v33, %v875_v32 }
 0x10a   :  { %1100 = vmatmul.bf16.vlgmr.msrb.gmra.mxu3 %v879_v34  ;;  %1128 = vmatmul.bf16.vlgmr.msra.gmra.mxu2 %v879_v34 }
 0x15c   :  { %v1087_v56 = vpop.f32.mrf.mxu1  ;;  %v1115_v57 = vpop.f32.mrf.mxu0 }
 0x15d   :  { %v1088_v3 = vadd.f32 %v1087_v56, %v914_v62  ;;  %v1116_v5 = vadd.f32 %v1115_v57, %v915_v0 }
 0x164   :  { %v1089_v1 = vpop.f32.mrf.mxu1  ;;  %v1117_v2 = vpop.f32.mrf.mxu0 }
 0x165   :  { %v1090_v6 = vadd.f32 %v1089_v1, %v914_v62  ;;  %v1118_v7 = vadd.f32 %v1117_v2, %v915_v0 }
 0x18d   :  { %v1101_v59 = vpop.f32.mrf.mxu3  ;;  %v1129_v61 = vpop.f32.mrf.mxu2 }
 0x18e   :  { %v1102_v8 = vadd.f32 %v1101_v59, %v1088_v3  ;;  %v1130_v9 = vadd.f32 %v1129_v61, %v1116_v5 }
 0x190   :  { %v1134_v44 = vmax.f32 %v1102_v8, 0.0  ;;  %v1135_v48 = vmax.f32 %v1130_v9, 0.0 }
 0x195   :  { %v1103_v10 = vpop.f32.mrf.mxu3  ;;  %v1131_v54 = vpop.f32.mrf.mxu2 }
 0x196   :  { %v1104_v37 = vadd.f32 %v1103_v10, %v1090_v6  ;;  %v1132_v63 = vadd.f32 %v1131_v54, %v1118_v7 }
 0x198   :  { %v1136_v11 = vmax.f32 %v1104_v37, 0.0  ;;  %v1137_v12 = vmax.f32 %v1132_v63, 0.0 }
 0x19a   :  { %v1138_v13 = vpack.c.bf16 %v1136_v11, %v1134_v44  ;;  %v1139_v14 = vpack.c.bf16 %v1137_v12, %v1135_v48 }
 0x19c   :  { %1280 = vmatmul.bf16.vlgmr.msra.gmra.mxu1 %v1138_v13  ;;  %1294 = vmatmul.bf16.vlgmr.msra.gmra.mxu3 %v1139_v14 }
 0x219   :  { %v1281_v15 = vpop.f32.mrf.mxu1 }
 0x21a   :  { %v1282_v17 = vadd.f32 %v2047_v16, %v1281_v15 }
 0x21f   :  { %v1295_v4 = vpop.f32.mrf.mxu3 }
 0x220   :  { %v1296_v18 = vadd.f32 %v1295_v4, %v1282_v17 }
 0x221   :  { %v1283_v60 = vpop.f32.mrf.mxu1 }
 0x222   :  { %1301 = vst.msk [vmem:[%s2442_s7] sm:$0xff] %vm1300_vm1, %v1296_v18  ;;  %v1284_v19 = vadd.f32 %v2047_v16, %v1283_v60 }
 0x227   :  { %v1297_v20 = vpop.f32.mrf.mxu3 }
 0x228   :  { %v1298_v21 = vadd.f32 %v1297_v20, %v1284_v19 }
 0x22a   :  { %1302 = vst.msk [vmem:[%s2442_s7 + $0x8] sm:$0xff] %vm1300_vm1, %v1298_v21 }
 0x22b   :  { %1307 = vsyncpa [#allocation3], 1 }
 0x22c   :  { %1308 = vsyncpa [#allocation5], 1 }

</bundles_post_ra>
